<compile_context>
chip_gen: v6e
topology: v6e:2x2x1
jax: 0.10.0
libtpu: 0.0.40
codegen_flags: <defaults>
</compile_context>

<pallas_src>
import functools
import math

import jax
import jax.numpy as jnp
import numpy as np
from jax.experimental import pallas as pl
from jax.experimental.pallas import tpu as pltpu


# Conservative, portable VMEM budgets (v5e default scoped limit is 16 MiB, v6e/v7x 32 MiB;
# v7x physical VMEM is only 64 MiB, so we never ask for more than 32 MiB).
_VMEM_LIMIT_BYTES = 32 * 1024 * 1024
_FUSED_WORKING_SET_BYTES = 24 * 1024 * 1024   # ~2x double-buffered (in + out) blocks


# --------------------------------------------------------------------------- gate math
def _channel_conv_sigmoid(pooled, w_ref):
    """sigmoid(zero-padded Conv1d(1,1,k) over channels) of pooled: (bb, C) float32.

    Implemented as k static shift + FMA ops (lane slice/concat on a tiny vector):
    pure VPU/XLU work, no MXU, no (C, C) banded matrix.  w_ref is a (k,) f32 SMEM ref.
    """
    bb, channels = pooled.shape
    k = w_ref.shape[0]
    pad = k // 2
    conv = w_ref[pad] * pooled                           # centre tap: no shift
    for t in range(k):
        d = t - pad                                      # static tap offset
        if d == 0:
            continue
        zeros = jnp.zeros((bb, abs(d)), dtype=pooled.dtype)
        if d > 0:    # shifted[c] = pooled[c + d], zero-padded at the top edge
            shifted = jnp.concatenate([pooled[:, d:], zeros], axis=1)
        else:        # shifted[c] = pooled[c + d], zero-padded at the bottom edge
            shifted = jnp.concatenate([zeros, pooled[:, :channels + d]], axis=1)
        conv = conv + w_ref[t] * shifted
    return jax.nn.sigmoid(conv)


# --------------------------------------------------------------------------- kernels
def _eca_fused_kernel(x_ref, w_ref, o_ref):
    """Fused path: x_ref/o_ref = (bb, C, HW) native dtype, w_ref = (k,) f32 in SMEM."""
    x = x_ref[...]                                       # native dtype, stays native
    hw = x_ref.shape[-1]
    # Global average pool; accumulate in f32 without materializing an f32 slab.
    pooled = jnp.sum(x, axis=-1, dtype=jnp.float32) * (1.0 / hw)      # (bb, C)
    gate = _channel_conv_sigmoid(pooled, w_ref)                        # (bb, C) f32
    # Cast the tiny gate once, then broadcast-multiply the native-dtype slab.
    o_ref[...] = x * gate[:, :, None].astype(x.dtype)


def _eca_pool_gate_kernel(x_ref, w_ref, gate_ref, acc_ref, *, hw):
    """Tiled pass 1: reduce over HW tiles, emit gate once per batch.

    x_ref: (1, C, thw) native; gate_ref: (1, C, 1) native; acc_ref: (1, C) f32 scratch.
    """
    hw_idx = pl.program_id(1)
    thw = x_ref.shape[-1]

    @pl.when(hw_idx == 0)
    def _init():
        acc_ref[...] = jnp.zeros_like(acc_ref)

    x = x_ref[...]
    if hw % thw != 0:
        # Mask the out-of-range lanes of the padded last tile before reducing.
        lane = jax.lax.broadcasted_iota(jnp.int32, x.shape, dimension=2)
        x = jnp.where(hw_idx * thw + lane < hw, x, jnp.zeros_like(x))
    acc_ref[...] += jnp.sum(x, axis=-1, dtype=jnp.float32)

    @pl.when(hw_idx == pl.num_programs(1) - 1)
    def _finalize():
        pooled = acc_ref[...] * (1.0 / hw)               # (1, C) f32
        gate = _channel_conv_sigmoid(pooled, w_ref)      # (1, C) f32
        gate_ref[...] = gate[:, :, None].astype(gate_ref.dtype)


def _eca_scale_kernel(x_ref, gate_ref, o_ref):
    """Tiled pass 2: pure lane-dense gate*x stream (native dtype)."""
    o_ref[...] = x_ref[...] * gate_ref[...]              # (1,C,thw) * (1,C,1)


# --------------------------------------------------------------------------- wrappers
def _pick_fused_batch_block(B, C, HW, itemsize):
    """Largest batch-fold bb (divisor of B) whose double-buffered in+out blocks fit VMEM,
    keeping >= 2 grid steps when B >= 2 (both v7x TensorCores busy).  None -> tiled path."""
    for bb in range(B, 0, -1):
        if B % bb:
            continue
        if B >= 2 and B // bb < 2:
            continue
        if 4 * bb * C * HW * itemsize <= _FUSED_WORKING_SET_BYTES:
            return bb
    return None


def _pick_hw_tile(C, HW, itemsize, tile_bytes=4 * 1024 * 1024):
    """Lane-dense HW tile: multiple of 128 (or the full HW if HW < 128), <= ~4 MiB/block."""
    if HW <= 128:
        return HW
    lanes = max(128, (tile_bytes // max(1, C * itemsize)) // 128 * 128)
    return int(min(lanes, (HW // 128) * 128))


def _eca_fused_call(x_flat, w, *, bb):
    B, C, HW = x_flat.shape
    nbytes = x_flat.dtype.itemsize
    k = w.shape[0]
    cost = pl.CostEstimate(
        flops=2 * B * C * HW + 2 * B * C * k,
        transcendentals=B * C,
        bytes_accessed=2 * B * C * HW * nbytes + 4 * k)
    return pl.pallas_call(
        _eca_fused_kernel,
        out_shape=jax.ShapeDtypeStruct((B, C, HW), x_flat.dtype),
        grid_spec=pltpu.PrefetchScalarGridSpec(
            num_scalar_prefetch=0,
            grid=(B // bb,),
            in_specs=[
                pl.BlockSpec((bb, C, HW), lambda i: (i, 0, 0)),
                pl.BlockSpec(memory_space=pltpu.MemorySpace.SMEM),   # (k,) conv weight
            ],
            out_specs=pl.BlockSpec((bb, C, HW), lambda i: (i, 0, 0)),
        ),
        compiler_params=pltpu.CompilerParams(
            dimension_semantics=("parallel",),
            vmem_limit_bytes=_VMEM_LIMIT_BYTES),
        cost_estimate=cost,
    )(x_flat, w)


def _eca_tiled_call(x_flat, w, *, thw):
    B, C, HW = x_flat.shape
    dtype = x_flat.dtype
    nbytes = dtype.itemsize
    k = w.shape[0]
    n_hw = pl.cdiv(HW, thw)

    # Pass 1: global average pool (reduction over HW tiles) + channel conv + sigmoid.
    gate = pl.pallas_call(
        functools.partial(_eca_pool_gate_kernel, hw=HW),
        out_shape=jax.ShapeDtypeStruct((B, C, 1), dtype),
        grid_spec=pltpu.PrefetchScalarGridSpec(
            num_scalar_prefetch=0,
            grid=(B, n_hw),
            in_specs=[
                pl.BlockSpec((1, C, thw), lambda b, h: (b, 0, h)),
                pl.BlockSpec(memory_space=pltpu.MemorySpace.SMEM),
            ],
            out_specs=pl.BlockSpec((1, C, 1), lambda b, h: (b, 0, 0)),
            scratch_shapes=[pltpu.VMEM((1, C), jnp.float32)],
        ),
        compiler_params=pltpu.CompilerParams(
            dimension_semantics=("parallel", "arbitrary"),
            vmem_limit_bytes=_VMEM_LIMIT_BYTES),
        cost_estimate=pl.CostEstimate(
            flops=B * C * HW + 2 * B * C * k,
            transcendentals=B * C,
            bytes_accessed=B * C * HW * nbytes + B * C * nbytes + 4 * k),
    )(x_flat, w)

    # Pass 2: lane-dense gate * x stream; both grid axes fully parallel.
    return pl.pallas_call(
        _eca_scale_kernel,
        out_shape=jax.ShapeDtypeStruct((B, C, HW), dtype),
        grid_spec=pltpu.PrefetchScalarGridSpec(
            num_scalar_prefetch=0,
            grid=(B, n_hw),
            in_specs=[
                pl.BlockSpec((1, C, thw), lambda b, h: (b, 0, h)),
                pl.BlockSpec((1, C, 1), lambda b, h: (b, 0, 0)),
            ],
            out_specs=pl.BlockSpec((1, C, thw), lambda b, h: (b, 0, h)),
        ),
        compiler_params=pltpu.CompilerParams(
            dimension_semantics=("parallel", "parallel"),
            vmem_limit_bytes=_VMEM_LIMIT_BYTES),
        cost_estimate=pl.CostEstimate(
            flops=B * C * HW,
            transcendentals=0,
            bytes_accessed=2 * B * C * HW * nbytes + B * C * nbytes),
    )(x_flat, gate)


def eca_kernel_size(channels: int, internal_reduce: int = 2, b: int = 1) -> int:
    k = int(abs((math.log(channels, 2) + b) / internal_reduce))
    return k if k % 2 else k + 1


@functools.partial(jax.jit, static_argnames=("force_tiled", "hw_tile"))
def eca_forward(x, conv_weight, force_tiled=False, hw_tile=None):
    """ECABlock forward.  x: (B, C, H, W); conv_weight: (k,) or (1, 1, k) float."""
    B, C, H, W = x.shape
    HW = H * W
    w = conv_weight.reshape(-1).astype(jnp.float32)
    k = w.shape[0]
    assert k % 2 == 1 and k // 2 < C, "ECA expects an odd conv kernel smaller than C"
    x_flat = x.reshape(B, C, HW)
    itemsize = x.dtype.itemsize

    bb = None if force_tiled else _pick_fused_batch_block(B, C, HW, itemsize)
    if bb is not None:
        out_flat = _eca_fused_call(x_flat, w, bb=bb)      # 1 HBM read + 1 write of x
    else:
        thw = hw_tile if hw_tile is not None else _pick_hw_tile(C, HW, itemsize)
        out_flat = _eca_tiled_call(x_flat, w, thw=thw)    # 2 reads + 1 write of x
    return out_flat.reshape(B, C, H, W)


# --------------------------------------------------------------------------- reference
def eca_reference(x, conv_weight):
    """Pure-JAX (f32) reference mirroring the PyTorch forward."""
    B, C, H, W = x.shape
    w = conv_weight.reshape(-1)
    k = w.shape[0]
    pad = k // 2
    pooled = jnp.mean(x, axis=(2, 3))                     # (B, C)
    pooled_pad = jnp.pad(pooled, ((0, 0), (pad, pad)))    # zero padding along channels
    conv = jnp.zeros_like(pooled)
    for t in range(k):
        conv = conv + w[t] * pooled_pad[:, t:t + C]
    gate = jax.nn.sigmoid(conv)[:, :, None, None]
    return gate * x


# --------------------------------------------------------------------------- demo/test
if __name__ == "__main__":
    base_key = jax.random.PRNGKey(0)

    def run_case(B, C, H, W, dtype, force_tiled=False, hw_tile=None, tol=1e-5):
        k = eca_kernel_size(C)
        kx, kw = jax.random.split(jax.random.fold_in(base_key, B * 1000 + C + H))
        x = jax.random.normal(kx, (B, C, H, W), dtype=jnp.float32).astype(dtype)
        w = jax.random.normal(kw, (k,), dtype=jnp.float32) * 0.5
        out = eca_forward(x, w, force_tiled=force_tiled, hw_tile=hw_tile)
        out = jax.block_until_ready(out)
        ref = eca_reference(x.astype(jnp.float32), w)
        np.testing.assert_allclose(np.asarray(out).astype(np.float32),
                                   np.asarray(ref), rtol=tol, atol=tol)

    # Fused single-pass path (whole (C, HW) slab per program), f32.
    run_case(2, 16, 8, 8, jnp.float32)
    # Tiled two-pass path (pooling reduction over two 128-lane HW tiles, then gate*x stream).
    run_case(2, 16, 16, 16, jnp.float32, force_tiled=True, hw_tile=128)
    # Native-dtype (bf16) streaming through the fused path.
    run_case(2, 32, 8, 8, jnp.bfloat16, tol=5e-2)

    print("KERNEL_OK")
</pallas_src>

<mosaic_0001>
module attributes {stable_mosaic.version = 11 : i64} {
  func.func @_eca_fused_kernel(%arg0: i32, %arg1: memref<1x16x64xf32, #tpu.memory_space<vmem>>, %arg2: memref<3xf32, #tpu.memory_space<smem>>, %arg3: memref<1x16x64xf32, #tpu.memory_space<vmem>>) attributes {dimension_semantics = [#tpu.dimension_semantics<parallel>], iteration_bounds = array<i64: 2>, scalar_prefetch = 0 : i64, scratch_operands = 0 : i64, tpu.core_type = #tpu.core_type<tc>, window_params = [{transform_indices = @transform_0, window_bounds = array<i64: 1, 16, 64>}, {transform_indices = @transform_1, window_bounds = array<i64: 3>}, {transform_indices = @transform_2, window_bounds = array<i64: 1, 16, 64>}]} {
    %c0 = arith.constant 0 : index
    %c0_0 = arith.constant 0 : index
    %c0_1 = arith.constant 0 : index
    %0 = vector.load %arg1[%c0, %c0_0, %c0_1] : memref<1x16x64xf32, #tpu.memory_space<vmem>>, vector<1x16x64xf32>
    %cst = arith.constant dense<0.000000e+00> : vector<1x16xf32>
    %1 = vector.multi_reduction <add>, %0, %cst [2] : vector<1x16x64xf32> to vector<1x16xf32>
    %cst_2 = arith.constant 1.562500e-02 : f32
    %2 = vector.broadcast %cst_2 : f32 to vector<1x16xf32>
    %3 = arith.mulf %1, %2 : vector<1x16xf32>
    %c1 = arith.constant 1 : index
    %4 = memref.load %arg2[%c1] : memref<3xf32, #tpu.memory_space<smem>>
    %5 = vector.broadcast %4 : f32 to vector<1x16xf32>
    %6 = arith.mulf %5, %3 : vector<1x16xf32>
    %cst_3 = arith.constant 0.000000e+00 : f32
    %7 = vector.broadcast %cst_3 : f32 to vector<1x1xf32>
    %8 = vector.extract_strided_slice %3 {offsets = [0, 0], sizes = [1, 15], strides = [1, 1]} : vector<1x16xf32> to vector<1x15xf32>
    %9 = tpu.concatenate %7, %8 in 1 : vector<1x1xf32>, vector<1x15xf32> -> vector<1x16xf32>
    %c0_4 = arith.constant 0 : index
    %10 = memref.load %arg2[%c0_4] : memref<3xf32, #tpu.memory_space<smem>>
    %11 = vector.broadcast %10 : f32 to vector<1x16xf32>
    %12 = arith.mulf %11, %9 : vector<1x16xf32>
    %13 = arith.addf %6, %12 : vector<1x16xf32>
    %cst_5 = arith.constant 0.000000e+00 : f32
    %14 = vector.broadcast %cst_5 : f32 to vector<1x1xf32>
    %15 = vector.extract_strided_slice %3 {offsets = [0, 1], sizes = [1, 15], strides = [1, 1]} : vector<1x16xf32> to vector<1x15xf32>
    %16 = tpu.concatenate %15, %14 in 1 : vector<1x15xf32>, vector<1x1xf32> -> vector<1x16xf32>
    %c2 = arith.constant 2 : index
    %17 = memref.load %arg2[%c2] : memref<3xf32, #tpu.memory_space<smem>>
    %18 = vector.broadcast %17 : f32 to vector<1x16xf32>
    %19 = arith.mulf %18, %16 : vector<1x16xf32>
    %20 = arith.addf %13, %19 : vector<1x16xf32>
    %21 = arith.negf %20 : vector<1x16xf32>
    %22 = math.exp %21 : vector<1x16xf32>
    %cst_6 = arith.constant 1.000000e+00 : f32
    %23 = vector.broadcast %cst_6 : f32 to vector<1x16xf32>
    %24 = arith.addf %23, %22 : vector<1x16xf32>
    %25 = arith.divf %23, %24 : vector<1x16xf32>
    %26 = vector.shape_cast %25 : vector<1x16xf32> to vector<1x16x1xf32>
    %27 = vector.broadcast %26 : vector<1x16x1xf32> to vector<1x16x64xf32>
    %28 = arith.mulf %0, %27 : vector<1x16x64xf32>
    %c0_7 = arith.constant 0 : index
    %c0_8 = arith.constant 0 : index
    %c0_9 = arith.constant 0 : index
    %29 = vector.load %arg3[%c0_7, %c0_8, %c0_9] : memref<1x16x64xf32, #tpu.memory_space<vmem>>, vector<1x16x64xf32>
    tpu.vector_store %arg3[%c0_7, %c0_8, %c0_9], %28 {strides = array<i32>} : memref<1x16x64xf32, #tpu.memory_space<vmem>>, vector<1x16x64xf32>,
    return
  }
  func.func @transform_0(%arg0: i32) -> (i32, i32, i32) {
    %c0_i32 = arith.constant 0 : i32
    %c0_i32_0 = arith.constant 0 : i32
    %c0_i32_1 = arith.constant 0 : i32
    return %arg0, %c0_i32, %c0_i32_0 : i32, i32, i32
  }
  func.func @transform_1(%arg0: i32) -> i32 {
    %c0_i32 = arith.constant 0 : i32
    %c0_i32_0 = arith.constant 0 : i32
    return %c0_i32 : i32
  }
  func.func @transform_2(%arg0: i32) -> (i32, i32, i32) {
    %c0_i32 = arith.constant 0 : i32
    %c0_i32_0 = arith.constant 0 : i32
    %c0_i32_1 = arith.constant 0 : i32
    return %arg0, %c0_i32, %c0_i32_0 : i32, i32, i32
  }
}

</mosaic_0001>

<bundles_post_ra>
// kernel: eca_forward.1
= control target key start
LH: loop header
LB: loop body
LE: loop exit
PB: predicated region body
PF: predicated region fallthrough
CT: control target
= control target key end

     0   :  { %7 = vsyncpa [#allocation3], 0  ;;  %s431_s9 = smov 0   ;;  %s481_s0 = inlined_call_operand.vmem [shape: f32[2,16,64], index: 0, kind: input, shape index: {}]   ;;  %s482_s1 = inlined_call_operand.vmem [shape: f32[3], index: 1, kind: input, shape index: {}]   ;;  %s483_s2 = inlined_call_operand.vmem [shape: f32[2,16,64], index: 2, kind: output, shape index: {}]  }
   0x1 LB: > { %s338_s10 = sadd.s32 4294967295, %s412_s9   ;;  %p340_p0 = scmp.ge.s32.totalorder %s412_s9, 1  ;;  %s412_s9 = sphi %s431_s9, %s13_s9  }
   0x2   : > { %p91_p1 = scmp.lt.s32.totalorder %s412_s9, 3  ;;  %s104_s13 = sshll.u32 %s482_s1, 4  ;;  %s105_s13 = int_to_ptr.vmem [resolvable:$true] %s104_s13 }
   0x3   : > { %p365_p3 = scmp.eq.s32.totalorder %s338_s10, 0  ;;  %s387_s15 = scalar_lea.vmem %s105_s13, 16 }
   0x4   : > { %p442_p2 = pnand %p340_p0, %p91_p1  ;;  %p388_p6 = scmp.ne.s32.totalorder %s105_s13, %s387_s15 }
   0x5   : > { %p395_p10 = scmp.lt.s32.totalorder %s105_s13, %s105_s13  ;;  %p396_p11 = scmp.lt.s32.totalorder %s387_s15, %s387_s15 }
   0x6   : > { %p361_p4 = pneg %p442_p2 }
   0x7   : > { %p397_p12 = por %p396_p11, %p395_p10 }
   0x8   : > { %p362_p5 = pnand %p365_p3, %p361_p4 }
   0xa   : > { %p389_p7 = pneg %p362_p5 }
   0xc   : > { %p390_p8 = pnand %p389_p7, %p388_p6 }
   0xe   : > { %p391_p9 = pneg %p390_p8 }
  0x10   : > { %p398_p13 = pnand %p397_p12, %p391_p9 }
  0x12   : > { %401 = shalt.err (!%p398_p13)
}
  0x13   : > { %s414_s16 = smov [#allocation2]   ;;  %125 = sbr.rel (%p442_p2) target bundleno = 470 (0x1d6), region = 28 }
  0x14   : > { %364 = dma.vmem_to_smem (!%p362_p5), %s105_s13, 16, %s414_s16, [#allocation3]  }
  0x18   : > { %407 = dma.done.wait (%p365_p3), [#allocation3], 16  }
  0x19   : > { %409 = vsyncadd (%p365_p3), [#allocation3], 4294967280 }
  0x1a   : > { %131 = sfence }
  0x1b   : > { %p148_p0 = scmp.lt.s32.totalorder %s338_s10, 1  ;;  %vm160_vm0 = vcmask 523264   ;;  %v175_v4 = vlaneseq  ;;  %s350_s21 = sld [smem:[#allocation2 + $0x2]]  ;;  %vm221_vm1 = vcmask 121912   ;;  %vm224_vm2 = vcmask 121856  }
  0x1c   : > { %s192_s22 = sld [smem:[#allocation2]]  ;;  %vm187_vm3 = vcmask 138312   ;;  %vm190_vm4 = vcmask 7168   ;;  %v415_v35 = vmov 0  }
  0x1d   : > { %s486_s10 = smov (!%p148_p0, %s338_s10), 1  ;;  %v176_v5 = vand.u32 127, %v175_v4  ;;  %v179_v7 = vshrl.u32 %v175_v4, 7  ;;  %377 = vset.pattern.permute.xlu1 %v415_v35  ;;  %378 = vset.pattern.permute.xlu0 %v415_v35  ;;  %s349_s23 = sld [smem:[#allocation2 + $0x1]] }
  0x1e   : > { %s355_s17 = sshll.u32 %s486_s10, 4 }
  0x1f   : > { %s152_s20 = scalar_lea.vmem %s481_s0, %s355_s17  ;;  %v177_v6 = vadd.s32 4294967295, %v176_v5  ;;  %v211_v8 = vadd.s32 1, %v176_v5  ;;  %v182_v9 = vadd.s32 4294967287, %v176_v5  ;;  %v216_v10 = vadd.s32 4294967289, %v176_v5  ;;  %s157_s26 = scalar_lea.vmem %s483_s2, %s355_s17 }
  0x20   : > { %v461_v0 = vld [vmem:[%s152_s20] sm:$0xff]  ;;  %v463_v1 = vld [vmem:[%s152_s20 + $0x8] sm:$0xff]  ;;  %v232_v26 = vsub.s32 1, %v179_v7  ;;  %v198_v28 = vsub.s32 0, %v179_v7 }
  0x21   : > { %v161_v2 = vsel %vm160_vm0, %v461_v0, 0.0  ;;  %v164_v3 = vsel %vm160_vm0, %v463_v1, 0.0  ;;  %v180_v12 = vsub.s32 %v177_v6, %v179_v7  ;;  %v214_v13 = vsub.s32 %v211_v8, %v179_v7 }
  0x22   : > { %162 = vadd.xlane.f32.xlu0 %v161_v2  ;;  %v185_v15 = vsub.s32 %v182_v9, %v179_v7  ;;  %v219_v16 = vsub.s32 %v216_v10, %v179_v7  ;;  %v227_v23 = vstv %s350_s21  ;;  %v193_v24 = vstv %s192_s22 }
  0x23   : > { %v170_v36 = vstv %s349_s23 }
  0x26   : > { %165 = vadd.xlane.f32.xlu0 %v164_v3 }
  0xab   : > { %v163_v11 = vpop.xlane.xlu0 %162 }
  0xac   : > { %v167_v14 = vmul.f32 0.015625, %v163_v11 }
  0xae   : > { %v181_v19 = vrot.slane %v167_v14, %v180_v12  ;;  %v215_v20 = vrot.slane %v167_v14, %v214_v13  ;;  %v171_v37 = vmul.f32 %v170_v36, %v167_v14 }
  0xaf   : > { %v166_v17 = vpop.xlane.xlu0 %165 }
  0xb0   : > { %v168_v18 = vmul.f32 0.015625, %v166_v17 }
  0xb2   : > { %v186_v21 = vrot.slane %v168_v18, %v185_v15  ;;  %v220_v22 = vrot.slane %v168_v18, %v219_v16  ;;  %v172_v44 = vmul.f32 %v170_v36, %v168_v18 }
  0xb4   : > { %v222_v25 = vsel %vm221_vm1, %v220_v22, %v215_v20  ;;  %v188_v27 = vsel %vm187_vm3, %v186_v21, %v181_v19 }
  0xb5   : > { %v225_v29 = vsel %vm224_vm2, %v222_v25, 0.0  ;;  %v191_v30 = vsel %vm190_vm4, 0.0, %v188_v27 }
  0xb6   : > { %v228_v31 = vmul.f32 %v227_v23, %v225_v29  ;;  %v194_v32 = vmul.f32 %v193_v24, %v191_v30 }
  0xb8   : > { %v233_v33 = vrot.slane %v228_v31, %v232_v26  ;;  %v199_v34 = vrot.slane %v194_v32, %v198_v28 }
  0xba   : > { %235 = vbcast.lane.b32.xlu0 %v233_v33, 256  ;;  %201 = vbcast.lane.b32.xlu1 %v199_v34, 256 }
  0xbe   : > { %205 = vbcast.lane.b32.xlu1 %v199_v34, 264 }
  0xc2   : > { %239 = vbcast.lane.b32.xlu1 %v233_v33, 264 }
 0x12c   : > { %v202_v38 = vpop.permute.xlu1 %201  ;;  %v236_v40 = vpop.permute.xlu0 %235 }
 0x12d   : > { %v209_v39 = vadd.f32 %v202_v38, %v171_v37 }
 0x12f   : > { %v243_v41 = vadd.f32 %v236_v40, %v209_v39 }
 0x130   : > { %v206_v42 = vpop.permute.xlu1 %205 }
 0x131   : > { %v351_v43 = vmul.f32 -1.442695, %v243_v41  ;;  %v210_v45 = vadd.f32 %v206_v42, %v172_v44 }
 0x133   : > { %379 = vpow2.f32 %v351_v43 }
 0x134   : > { %v240_v46 = vpop.permute.xlu1 %239 }
 0x135   : > { %v244_v47 = vadd.f32 %v240_v46, %v210_v45 }
 0x137   : > { %v352_v48 = vmul.f32 -1.442695, %v244_v47 }
 0x139   : > { %381 = vpow2.f32 %v352_v48 }
 0x140   : > { %v380_v49 = vpop.eup %379 }
 0x141   : > { %v251_v50 = vadd.f32 1.0, %v380_v49 }
 0x143   : > { %383 = vrcp.f32 %v251_v50 }
 0x146   : > { %v382_v51 = vpop.eup %381 }
 0x147   : > { %v252_v52 = vadd.f32 1.0, %v382_v51 }
 0x149   : > { %385 = vrcp.f32 %v252_v52 }
 0x150   : > { %v384_v53 = vpop.eup %383 }
 0x151   : > { %259 = vperm.xlu1 %377, %v384_v53  }
 0x156   : > { %v386_v54 = vpop.eup %385 }
 0x157   : > { %264 = vperm.xlu1 %377, %v386_v54  }
 0x1cc   : > { %v260_v55 = vpop.permute.xlu1 %259 }
 0x1cd   : > { %v267_v56 = vmul.f32 %v260_v55, %v461_v0 }
 0x1cf   : > { %269 = vst.msk [vmem:[%s157_s26] sm:$0xff] %vm160_vm0, %v267_v56 }
 0x1d2   : > { %v265_v57 = vpop.permute.xlu1 %264 }
 0x1d3   : > { %v268_v58 = vmul.f32 %v265_v57, %v463_v1 }
 0x1d5   : > { %270 = vst.msk [vmem:[%s157_s26 + $0x8] sm:$0xff] %vm160_vm0, %v268_v58 }
 0x1d6 PF: > { %s13_s9 = sadd.s32 1, %s412_s9  }
 0x1d7   : > { %p10_p1 = scmp.ge.s32.totalorder %s13_s9, 4  }
 0x1d9   :  { %12 = sbr.rel (!%p10_p1) target bundleno = 1 (0x1), region = 63 }
 0x1de   :  { %292 = vsyncpa [#allocation3], 1 }
 0x1df   :  { %294 = vsyncpa [#allocation3 + $0x1], 1 }

</bundles_post_ra>
